<compile_context>
chip_gen: v7x
topology: tpu7x:2x2x1
jax: 0.10.0
libtpu: 0.0.40
codegen_flags: <defaults>
</compile_context>

<pallas_src>
import jax
import jax.numpy as jnp
from jax.experimental import pallas as pl
from jax.experimental.pallas import tpu as pltpu


def _round_up(x, m):
    return ((x + m - 1) // m) * m


# -----------------------------------------------------------------------------
# Pallas kernel: fused transposed GEMM + bias + ReLU (lane-dense output)
# -----------------------------------------------------------------------------
def _gemm_bias_relu_t_kernel(pt_ref, wt_ref, b_ref, o_ref):
    """o (Cout, TM) = relu( wt (Cout, K) @ pt (K, TM) + b (Cout, 1) ).

    wt/pt are bf16; accumulation, bias add and ReLU are f32 (MXU bf16 path,
    f32 epilogue -> v5e-safe).  Output lane axis is TM (multiple of 256).
    """
    acc = jnp.dot(wt_ref[...], pt_ref[...], preferred_element_type=jnp.float32)
    acc = acc + b_ref[...]                       # (Cout, 1) broadcasts over lanes
    o_ref[...] = jnp.maximum(acc, 0.0).astype(o_ref.dtype)


def gemm_bias_relu_t(patches_t, wt_mat, bias, *, min_parallel_blocks=2,
                     vmem_budget_bytes=8 << 20):
    """Batch-folded transposed GEMM: returns relu(W^T @ patches^T + b).

    patches_t: (K_pad, MT)   bf16  (K_pad = round_up(Cin*KH*KW, 16), MT = N*Ho*Wo)
    wt_mat:    (Cout, K_pad) bf16
    bias:      (Cout,)       f32
    returns:   (Cout, m_pad) f32   (channel-major, lane-dense)
    """
    K_pad, MT = patches_t.shape
    Cout = wt_mat.shape[0]

    # VMEM-budgeted tile cap: double-buffered bf16 patches tile + double-buffered
    # f32 output tile must fit a conservative budget (v7x-safe: 32 MiB scoped).
    bytes_per_m = 2 * K_pad * 2 + 2 * Cout * 4
    cap = max(256, (vmem_budget_bytes // bytes_per_m) // 256 * 256)

    # 256-aligned lane tile (v6e/v7x MXU width), sized to keep >= 2 parallel
    # blocks in the grid so both v7x TensorCores stay busy.
    tile_m = _round_up(-(-MT // max(min_parallel_blocks, 1)), 256)
    tile_m = max(256, min(tile_m, cap))
    m_pad = _round_up(MT, tile_m)
    if m_pad != MT:
        patches_t = jnp.pad(patches_t, ((0, 0), (0, m_pad - MT)))
    b2 = bias.reshape(Cout, 1).astype(jnp.float32)

    n_steps = m_pad // tile_m
    working_set = (2 * K_pad * tile_m * 2          # patches tile, double-buffered
                   + 2 * Cout * tile_m * 4         # output tile, double-buffered
                   + Cout * K_pad * 2 + Cout * 4)  # resident weight + bias
    cost = pl.CostEstimate(
        flops=2 * Cout * K_pad * m_pad,
        transcendentals=0,
        bytes_accessed=(K_pad * m_pad * 2 + Cout * K_pad * 2 + Cout * 4
                        + Cout * m_pad * 4),
    )

    return pl.pallas_call(
        _gemm_bias_relu_t_kernel,
        out_shape=jax.ShapeDtypeStruct((Cout, m_pad), jnp.float32),
        grid_spec=pltpu.PrefetchScalarGridSpec(
            num_scalar_prefetch=0,
            grid=(n_steps,),
            in_specs=[
                # patches^T: full K, lane-dense M tile (streaming operand)
                pl.BlockSpec((K_pad, tile_m), lambda m: (0, m)),
                # full (tiny) weight, resident across the grid
                pl.BlockSpec((Cout, K_pad), lambda m: (0, 0)),
                # bias as (Cout, 1) column, broadcast over lanes in-kernel
                pl.BlockSpec((Cout, 1), lambda m: (0, 0)),
            ],
            out_specs=pl.BlockSpec((Cout, tile_m), lambda m: (0, m)),
        ),
        compiler_params=pltpu.CompilerParams(
            dimension_semantics=("parallel",),
            vmem_limit_bytes=int(min(32 << 20, max(4 << 20, 4 * working_set)))),
        cost_estimate=cost,
    )(patches_t, wt_mat, b2)


# -----------------------------------------------------------------------------
# Synthetic inner model: valid 3x3 conv + bias + ReLU (NCHW in, NCHW out)
# -----------------------------------------------------------------------------
class Conv3x3ReLU:
    def __init__(self, cin, cout, key):
        w_key, b_key = jax.random.split(key)
        fan_in = cin * 3 * 3
        # deterministic in-script init (no checkpoint loading); params kept f32
        self.weight = (jax.random.normal(w_key, (3, 3, cin, cout), jnp.float32)
                       / jnp.sqrt(float(fan_in)))            # HWIO
        self.bias = jax.random.normal(b_key, (cout,), jnp.float32) * 0.1
        self.cin, self.cout = cin, cout

    def __call__(self, x_nchw):
        N, C, H, W = x_nchw.shape
        KH, KW = 3, 3
        Ho, Wo = H - KH + 1, W - KW + 1
        M = Ho * Wo
        K = C * KH * KW
        K_pad = _round_up(K, 16)          # bf16 sublane pack

        # Cast to bf16 BEFORE im2col so the 9x-replicated patches are built and
        # moved through HBM in bf16 (no second full-array cast pass).
        x_bf = x_nchw.astype(jnp.bfloat16)

        # im2col^T with batch folded into the lane axis: (K, N*M),
        # K order = (cin, kh, kw), built straight from NCHW (no NHWC transpose).
        cols = [x_bf[:, :, kh:kh + Ho, kw:kw + Wo]
                for kh in range(KH) for kw in range(KW)]
        patches = jnp.stack(cols, axis=2)                     # (N, C, 9, Ho, Wo)
        patches_t = jnp.transpose(patches, (1, 2, 0, 3, 4)).reshape(K, N * M)
        if K_pad != K:
            patches_t = jnp.pad(patches_t, ((0, K_pad - K), (0, 0)))

        # weight HWIO -> (Cout, K_pad) with matching (cin, kh, kw) K-ordering
        wt_mat = jnp.transpose(self.weight, (3, 2, 0, 1)).reshape(self.cout, K)
        wt_mat = wt_mat.astype(jnp.bfloat16)
        if K_pad != K:
            wt_mat = jnp.pad(wt_mat, ((0, 0), (0, K_pad - K)))

        out = gemm_bias_relu_t(patches_t, wt_mat, self.bias)  # (Cout, m_pad) f32

        # channel-major already -> slice padded lanes, unfold batch, NCHW
        out = out[:, :N * M].reshape(self.cout, N, Ho, Wo)
        return jnp.transpose(out, (1, 0, 2, 3))


# -----------------------------------------------------------------------------
# ModelWrapper: exact forward-pass semantics of the PyTorch module
# -----------------------------------------------------------------------------
class ModelWrapper:
    def __init__(self, model, input_shapes, output_shapes, name="ModelWrapper"):
        self.model = model
        self.input_shapes = {
            key: {k: tuple(int(s) for s in v) for k, v in val.items()}
            for key, val in input_shapes.items()}
        self.output_shapes = {
            key: {k: tuple(int(s) for s in v) for k, v in val.items()}
            for key, val in output_shapes.items()}
        self.name = name
        self.input_keys = list(input_shapes.keys())
        self.output_keys = list(output_shapes.keys())

    def get_example_inputs(self, key=None):
        # TODO(synk): torch device selection (cuda/mps/cpu) has no JAX analogue;
        # arrays are placed on the default TPU backend.
        if key is None:
            key = jax.random.PRNGKey(0)
        inputs = {}
        for k, v in self.input_shapes.items():
            key, sub = jax.random.split(key)
            inputs[k] = jax.random.uniform(
                sub, (1, 1) + tuple(int(s) for s in v["shape"]), dtype=jnp.float32)
        return inputs

    def to(self, device):
        return self  # device placement handled by JAX default backend

    def forward(self, inputs):
        if isinstance(inputs, dict):
            inputs = [inputs[key] for key in self.input_keys]
        if isinstance(inputs, list) and len(inputs) == 1:
            inputs = inputs[0]
        outputs = self.model(inputs)
        if not isinstance(outputs, list):
            outputs = [outputs]
        outputs = {key: val for key, val in zip(self.output_keys, outputs)}
        return outputs

    __call__ = forward


# -----------------------------------------------------------------------------
if __name__ == "__main__":
    key = jax.random.PRNGKey(0)
    x_key, m_key = jax.random.split(key)

    N, Cin, H, W = 2, 4, 16, 16
    Cout = 8
    x = jax.random.normal(x_key, (N, Cin, H, W), jnp.float32)  # NCHW input

    model = Conv3x3ReLU(Cin, Cout, m_key)
    wrapper = ModelWrapper(
        model,
        input_shapes={"x": {"shape": (H, W)}},
        output_shapes={"out": {"shape": (H - 2, W - 2)}},
        name="PallasConvWrapper",
    )

    outputs = wrapper({"x": x})
    y = outputs["out"]
    jax.block_until_ready(y)

    # Reference with matching bf16 MXU operands and f32 accumulation
    # (tolerance loosened vs f32 reference because operands are bf16).
    ref = jax.lax.conv_general_dilated(
        x.astype(jnp.bfloat16), model.weight.astype(jnp.bfloat16),
        window_strides=(1, 1), padding="VALID",
        dimension_numbers=("NCHW", "HWIO", "NCHW"),
        preferred_element_type=jnp.float32)
    ref = jnp.maximum(ref + model.bias.reshape(1, Cout, 1, 1), 0.0)

    assert set(outputs.keys()) == {"out"}
    assert y.shape == (N, Cout, H - 2, W - 2), y.shape
    assert jnp.allclose(y, ref, atol=1e-2, rtol=1e-2), \
        float(jnp.max(jnp.abs(y - ref)))
    print("KERNEL_OK")
</pallas_src>

<mosaic_0001>
module attributes {stable_mosaic.version = 11 : i64} {
  func.func @_gemm_bias_relu_t_kernel(%arg0: i32, %arg1: memref<48x256xbf16, #tpu.memory_space<vmem>>, %arg2: memref<8x48xbf16, #tpu.memory_space<vmem>>, %arg3: memref<8x1xf32, #tpu.memory_space<vmem>>, %arg4: memref<8x256xf32, #tpu.memory_space<vmem>>) attributes {dimension_semantics = [#tpu.dimension_semantics<parallel>], iteration_bounds = array<i64: 2>, scalar_prefetch = 0 : i64, scratch_operands = 0 : i64, tpu.core_type = #tpu.core_type<tc>, window_params = [{transform_indices = @transform_0, window_bounds = array<i64: 48, 256>}, {pipeline_mode = #tpu.pipeline_mode<synchronous>, transform_indices = @transform_1, window_bounds = array<i64: 8, 48>}, {pipeline_mode = #tpu.pipeline_mode<synchronous>, transform_indices = @transform_2, window_bounds = array<i64: 8, 1>}, {transform_indices = @transform_3, window_bounds = array<i64: 8, 256>}]} {
    %c0 = arith.constant 0 : index
    %c0_0 = arith.constant 0 : index
    %0 = vector.load %arg2[%c0, %c0_0] : memref<8x48xbf16, #tpu.memory_space<vmem>>, vector<8x48xbf16>
    %c0_1 = arith.constant 0 : index
    %c0_2 = arith.constant 0 : index
    %1 = vector.load %arg1[%c0_1, %c0_2] : memref<48x256xbf16, #tpu.memory_space<vmem>>, vector<48x256xbf16>
    %cst = arith.constant dense<0.000000e+00> : vector<8x256xf32>
    %2 = tpu.matmul %0, %1, %cst {dimension_numbers = #tpu.dot_dimension_numbers<[1], [0], [0], [1], [0, 0, 1, 1], [], []>} : vector<8x48xbf16>, vector<48x256xbf16>, vector<8x256xf32> -> vector<8x256xf32>
    %c0_3 = arith.constant 0 : index
    %c0_4 = arith.constant 0 : index
    %3 = vector.load %arg3[%c0_3, %c0_4] : memref<8x1xf32, #tpu.memory_space<vmem>>, vector<8x1xf32>
    %4 = vector.broadcast %3 : vector<8x1xf32> to vector<8x256xf32>
    %5 = arith.addf %2, %4 : vector<8x256xf32>
    %cst_5 = arith.constant 0.000000e+00 : f32
    %6 = vector.broadcast %cst_5 : f32 to vector<8x256xf32>
    %7 = arith.maximumf %5, %6 : vector<8x256xf32>
    %c0_6 = arith.constant 0 : index
    %c0_7 = arith.constant 0 : index
    %8 = vector.load %arg4[%c0_6, %c0_7] : memref<8x256xf32, #tpu.memory_space<vmem>>, vector<8x256xf32>
    tpu.vector_store %arg4[%c0_6, %c0_7], %7 {strides = array<i32>} : memref<8x256xf32, #tpu.memory_space<vmem>>, vector<8x256xf32>,
    return
  }
  func.func @transform_0(%arg0: i32) -> (i32, i32) {
    %c0_i32 = arith.constant 0 : i32
    %c0_i32_0 = arith.constant 0 : i32
    return %c0_i32, %arg0 : i32, i32
  }
  func.func @transform_1(%arg0: i32) -> (i32, i32) {
    %c0_i32 = arith.constant 0 : i32
    %c0_i32_0 = arith.constant 0 : i32
    %c0_i32_1 = arith.constant 0 : i32
    return %c0_i32, %c0_i32_0 : i32, i32
  }
  func.func @transform_2(%arg0: i32) -> (i32, i32) {
    %c0_i32 = arith.constant 0 : i32
    %c0_i32_0 = arith.constant 0 : i32
    %c0_i32_1 = arith.constant 0 : i32
    return %c0_i32, %c0_i32_0 : i32, i32
  }
  func.func @transform_3(%arg0: i32) -> (i32, i32) {
    %c0_i32 = arith.constant 0 : i32
    %c0_i32_0 = arith.constant 0 : i32
    return %c0_i32, %arg0 : i32, i32
  }
}

</mosaic_0001>

<bundles_post_ra>
// kernel: tpu_custom_call.1
= control target key start
LH: loop header
LB: loop body
LE: loop exit
PB: predicated region body
PF: predicated region fallthrough
CT: control target
= control target key end

     0   :  { %8 = vsyncpa [#allocation3], 0  ;;  %s739_s0 = inlined_call_operand.hbm [shape: bf16[48,512], index: 0, kind: input, shape index: {}]   ;;  %s740_s1 = inlined_call_operand.vmem [shape: bf16[8,48], index: 1, kind: input, shape index: {}]   ;;  %s741_s2 = inlined_call_operand.vmem [shape: f32[8,1], index: 2, kind: input, shape index: {}]   ;;  %s742_s3 = inlined_call_operand.hbm [shape: f32[8,512], index: 3, kind: output, shape index: {}]  }
   0x1   :  { %10 = vsyncpa [#allocation3 + $0x1], 0 }
   0x2   :  { %11 = vsyncpa [#allocation4], 0 }
   0x3   :  { %13 = vsyncpa [#allocation4 + $0x1], 0  ;;  %s576_s12 = smov 0   ;;  %s578_s13 = smov 0  }
   0x4   :  { %s580_s14 = smov 0   ;;  %s582_s15 = smov 0  }
   0x5 LB: > { %s597_s16 = sadd.s32 4294967295, %s548_s15   ;;  %s369_s17 = sadd.s32 4294967294, %s548_s15   ;;  %s548_s15 = sphi %s582_s15, %s755_s15   ;;  %s544_s14 = sphi %s580_s14, %s754_s14   ;;  %s540_s13 = sphi %s578_s13, %s753_s13   ;;  %s536_s12 = sphi %s576_s12, %s752_s12  }
   0x6   : > { %s601_s18 = sadd.s32 1, %s548_s15   ;;  %s26_s19 = sadd.s32 1, %s544_s14 }
   0x7   : > { %s23_s20 = ssub.s32 %s548_s15, %s601_s18  ;;  %p33_p0 = scmp.ne.s32.totalorder %s544_s14, %s540_s13 }
   0x8   : > { %p24_p1 = scmp.eq.s32.totalorder %s23_s20, 0  ;;  %p34_p2 = scmp.eq.s32.totalorder %s548_s15, 0 }
   0x9   : > { %p39_p3 = scmp.ne.s32.totalorder %s540_s13, %s536_s12  ;;  %p40_p4 = scmp.eq.s32.totalorder %s597_s16, 0 }
   0xa   : > { %s613_s21 = scalar_select %p24_p1, %s544_s14, %s26_s19  }
   0xb   : > { %p35_p5 = por %p34_p2, %p33_p0  ;;  %p615_p6 = por %p40_p4, %p39_p3 }
   0xc   : > { %p105_p7 = scmp.eq.s32.totalorder %s597_s16, 1  ;;  %p111_p8 = scmp.eq.s32.totalorder %s369_s17, 1 }
   0xd   : > { %p404_p10 = scmp.lt.s32.totalorder %s548_s15, 2  ;;  %s137_s25 = sand.u32 1, %s544_s14  }
   0xe   : > { %p622_p11 = por %p105_p7, %p33_p0  ;;  %p626_p12 = por %p111_p8, %p39_p3 }
   0xf   : > { %s388_s26 = sshll.u32 %s548_s15, 7  ;;  %s390_s27 = smul.u32 48, %s137_s25 }
  0x10   : > { %s745_s23 = scalar_select %p622_p11, 1, 0 }
  0x11   : > { %s746_s24 = scalar_select %p626_p12, 1, 0 }
  0x12   : > { %s635_s30 = scalar_lea.hbm %s739_s0, %s388_s26  ;;  %p637_p13 = pnand %p404_p10, %p35_p5 }
  0x13   : > { %s141_s5 = scalar_lea.vmem [#allocation2], %s390_s27  ;;  %s644_s7 = scalar_lea.sflag [#allocation3], %s137_s25 }
  0x14   : > { %s148_s6 = sshll.u32 %s141_s5, 4  ;;  %s452_s8 = scalar_lea.hbm %s635_s30, 768  ;;  %s641_s6 = int_to_ptr.vmem [resolvable:$true] %s148_s6 }
  0x15   : > { %p453_p1 = scmp.ne.s32.totalorder %s635_s30, %s452_s8  ;;  %p454_p2 = pneg %p637_p13 }
  0x16   : > { %s457_s11 = scalar_lea.hbm %s739_s0, 1536  ;;  %p458_p5 = scmp.lt.u32.totalorder %s635_s30, %s739_s0 }
  0x17   : > { %p455_p3 = pnand %p454_p2, %p453_p1  ;;  %p459_p7 = scmp.lt.u32.totalorder %s457_s11, %s452_s8 }
  0x18   : > { %p461_p10 = scmp.lt.u32.totalorder %s452_s8, %s635_s30 }
  0x19   : > { %p456_p4 = pneg %p455_p3  ;;  %p460_p8 = por %p459_p7, %p458_p5 }
  0x1b   : > { %p462_p9 = por %p461_p10, %p460_p8 }
  0x1d   : > { %p463_p0 = pnand %p462_p9, %p456_p4 }
  0x1f   : > { %466 = shalt.err (!%p463_p0)
}
  0x20   : > { %s467_s20 = scalar_lea.vmem %s641_s6, 768  ;;  %s550_s25 = smov [#allocation2]  }
  0x21   : > { %p468_p1 = scmp.ne.s32.totalorder %s641_s6, %s467_s20  ;;  %s472_s26 = sshll.u32 %s550_s25, 4  ;;  %s473_s26 = int_to_ptr.vmem [resolvable:$false] %s472_s26 }
  0x22   : > { %s474_s27 = scalar_lea.vmem %s473_s26, 1536  ;;  %p475_p11 = scmp.lt.s32.totalorder %s641_s6, %s473_s26 }
  0x23   : > { %p470_p3 = pnand %p468_p1, %p454_p2  ;;  %p476_p5 = scmp.lt.s32.totalorder %s474_s27, %s467_s20 }
  0x25   : > { %p471_p12 = pneg %p470_p3  ;;  %p477_p7 = por %p476_p5, %p475_p11 }
  0x27   : > { %p478_p8 = pnand %p477_p7, %p471_p12 }
  0x29   : > { %481 = shalt.err (!%p478_p8)
}
  0x2a   : > { %s551_s28 = smov 256   ;;  %s552_s29 = smov 128  }
  0x2b   : > { %s553_s5 = smov 8   ;;  %p156_p9 = scmp.lt.s32.totalorder %s548_s15, 3 }
  0x2c   : > { %399 = dma.hbm_to_vmem [thread:$0]  (!%p637_p13), %s635_s30, 768, %s641_s6, %s644_s7, %s551_s28, %s552_s29, %s553_s5  }
  0x2d   : > { %p748_p0 = scmp.ge.s32.totalorder %s548_s15, 1 }
  0x2f   : > { %p157_p2 = pnand %p748_p0, %p156_p9 }
  0x30   : > { %s676_s8 = sand.u32 (!%p157_p2), 1, %s540_s13  }
  0x31   : > { %160 = sbr.rel (%p157_p2) target bundleno = 302 (0x12e), region = 32  ;;  %s163_s10 = scalar_lea.sflag (!%p157_p2), [#allocation3], %s676_s8 }
  0x32   : > { %s391_s9 = smul.u32 (!%p157_p2), 48, %s676_s8 }
  0x34   : > { %s166_s11 = scalar_lea.vmem (!%p157_p2), [#allocation2], %s391_s9 }
  0x38   : > { %527 = dma.done.wait (%p615_p6), %s163_s10, 768  }
  0x39   : > { %529 = vsyncadd (%p615_p6), %s163_s10, 4294966528  ;;  %v554_v0 = vmov 0   ;;  %v443_v1 = vld [vmem:[%s166_s11 + $0x4] ss:$8 sps:$4 sm:$0xff]   ;;  %v445_v2 = vld [vmem:[%s166_s11] ss:$8 sps:$4 sm:$0xff]  }
  0x3a   : > { %271 = vmatprep.mubr.bf16.mxu0 %v554_v0  ;;  %442 = vset.pattern.permute.xlu0 %v554_v0  ;;  %v446_v3 = vld [vmem:[%s166_s11 + $0x14] ss:$8 sps:$4 sm:$0xff]   ;;  %v448_v4 = vld [vmem:[%s166_s11 + $0x10] ss:$8 sps:$4 sm:$0xff]   ;;  %v449_v5 = vld [vmem:[%s166_s11 + $0x24] ss:$8 sps:$4 sm:$0xff]  }
  0x3b   : > { %239 = vmatprep.subr.bf16.mxu0 %v443_v1  ;;  %v199_v6 = vld [vmem:[%s741_s2] sm:$0xff]  ;;  %vm235_vm0 = vcmask 392192   ;;  %s375_s7 = sshll.u32 %s676_s8, 4  ;;  %s389_s17 = sshll.u32 %s597_s16, 8 }
  0x3c   : > { %240 = vmatpush1.bf16.msra.mxu0 %v445_v2  ;;  %202 = vperm.xlu0 %442, %v199_v6   ;;  %v451_v7 = vld [vmem:[%s166_s11 + $0x20] ss:$8 sps:$4 sm:$0xff]   ;;  %s188_s19 = scalar_lea.vmem [#allocation5], %s375_s7  ;;  %s695_s27 = scalar_lea.hbm %s742_s3, %s389_s17 }
  0x3d   : > { %241 = vmatprep.subr.bf16.mxu0 %v446_v3  ;;  %v192_v8 = vld [vmem:[%s740_s1] sm:$0xf]  ;;  %s299_s20 = sshll.u32 %s188_s19, 4  ;;  %s285_s16 = scalar_lea.sflag [#allocation4], %s676_s8  ;;  %s697_s20 = int_to_ptr.vmem [resolvable:$true] %s299_s20 }
  0x3e   : > { %s482_s28 = scalar_lea.vmem %s697_s20, 256  ;;  %p749_p11 = scmp.ne.s32.totalorder %s745_s23, 0 }
  0x3f   : > { %p483_p6 = scmp.ne.s32.totalorder %s697_s20, %s482_s28  ;;  %s555_s29 = smov [#allocation5]  }
  0x40   : > { %242 = vmatpush1.bf16.msra.mxu0 %v448_v4  ;;  %s486_s5 = sshll.u32 %s555_s29, 4  ;;  %s487_s5 = int_to_ptr.vmem [resolvable:$false] %s486_s5 }
  0x41   : > { %243 = vmatprep.subr.bf16.mxu0 %v449_v5  ;;  %p484_p12 = pnand %p483_p6, %p749_p11  ;;  %s488_s9 = scalar_lea.vmem %s487_s5, 512 }
  0x42   : > { %p489_p4 = scmp.lt.s32.totalorder %s697_s20, %s487_s5  ;;  %p490_p10 = scmp.lt.s32.totalorder %s488_s9, %s482_s28 }
  0x43   : > { %p485_p13 = pneg %p484_p12 }
  0x44   : > { %244 = vmatpush1.bf16.msra.mxu0 %v451_v7  ;;  %p491_p1 = por %p490_p10, %p489_p4 }
  0x46   : > { %p492_p3 = pnand %p491_p1, %p485_p13 }
  0x47   : > { %382 = vmatmul.mubr.msk.bf16.vlgmr.msra.gmra.mrb[0].mxu0 %vm235_vm0, %v192_v8 }
  0xbb   : > { %v203_v9 = vpop.permute.xlu0 %202 }
 0x11a   : > { %v273_v10 = vpop.f32.mrb[0].mxu0 }
 0x11b   : > { %v274_v11 = vadd.f32 %v273_v10, %v203_v9  ;;  %v275_v12 = vpop.f32.mrb[1].mxu0 }
 0x11c   : > { %v276_v13 = vadd.f32 %v275_v12, %v203_v9  ;;  %v277_v14 = vpop.f32.mrb[2].mxu0 }
 0x11d   : > { %v280_v15 = vmax.f32 %v274_v11, 0.0  ;;  %v278_v16 = vpop.f32.mrb[3].mxu0 }
 0x11e   : > { %v281_v17 = vmax.f32 %v276_v13, 0.0 }
 0x11f   : > { %282 = vst [vmem:[%s188_s19] sm:$0xff] %v280_v15 }
 0x120   : > { %283 = vst [vmem:[%s188_s19 + $0x8] sm:$0xff] %v281_v17 }
 0x121   : > { %495 = shalt.err (!%p492_p3)
}
 0x122   : > { %s496_s8 = scalar_lea.hbm %s695_s27, 256  ;;  %s500_s30 = scalar_lea.hbm %s742_s3, 512 }
 0x123   : > { %p497_p5 = scmp.ne.s32.totalorder %s695_s27, %s496_s8  ;;  %p501_p9 = scmp.lt.u32.totalorder %s695_s27, %s742_s3 }
 0x124   : > { %p502_p0 = scmp.lt.u32.totalorder %s500_s30, %s496_s8  ;;  %p504_p6 = scmp.lt.u32.totalorder %s496_s8, %s695_s27 }
 0x125   : > { %p498_p7 = pnand %p497_p5, %p749_p11 }
 0x126   : > { %p503_p2 = por %p502_p0, %p501_p9 }
 0x127   : > { %p499_p8 = pneg %p498_p7 }
 0x128   : > { %p505_p12 = por %p504_p6, %p503_p2 }
 0x12a   : > { %p506_p13 = pnand %p505_p12, %p499_p8 }
 0x12c   : > { %509 = shalt.err (!%p506_p13)
}
 0x12d   : > { %394 = dma.vmem_to_hbm [thread:$0]  (%p749_p11), %s697_s20, 256, %s695_s27, %s285_s16  }
 0x12e PF: > { %s311_s6 = sand.u32 1, %s536_s12   ;;  %p750_p4 = scmp.ne.s32.totalorder %s746_s24, 0 }
 0x12f   : > { %p751_p10 = scmp.ge.s32.totalorder %s548_s15, 2  ;;  %s312_s7 = scalar_lea.sflag [#allocation4], %s311_s6 }
 0x131   : > { %p401_p1 = pnand %p751_p10, %p750_p4 }
 0x133   : > { %531 = dma.done.wait (!%p401_p1), %s312_s7, 256  }
 0x134   : > { %533 = vsyncadd (!%p401_p1), %s312_s7, 4294967040  ;;  %p16_p3 = scmp.ge.s32.totalorder %s601_s18, 4   ;;  %s752_s12 = smov %s540_s13 }
 0x135   : > { %s753_s13 = smov %s544_s14  ;;  %s754_s14 = smov %s613_s21 }
 0x136   : > { %s755_s15 = smov %s601_s18  ;;  %18 = sbr.rel (!%p16_p3) target bundleno = 5 (0x5), region = 77 }
 0x13d   :  { %317 = vsyncpa [#allocation3], 1 }
 0x13e   :  { %319 = vsyncpa [#allocation3 + $0x1], 1 }
 0x13f   :  { %320 = vsyncpa [#allocation4], 1 }
 0x140   :  { %322 = vsyncpa [#allocation4 + $0x1], 1 }

</bundles_post_ra>
